<compile_context>
chip_gen: v5e
topology: v5e:2x2
jax: 0.10.0
libtpu: 0.0.40
codegen_flags: <defaults>
</compile_context>

<pallas_src>
import jax
import jax.numpy as jnp
import numpy as np
from jax.experimental import pallas as pl
from jax.experimental.pallas import tpu as pltpu


def _kl_pairs_kernel(pp_ref, pn_ref, rp_ref, rn_ref,
                     pos_lbl_ref, neg_lbl_ref,
                     pos_out_ref, neg_out_ref):
    """Accumulate per-batch masked KL sums over sequence tiles.

    pp/pn/rp/rn refs: (1, TS, V) logit tiles (policy/reference, pos/neg).
    pos_lbl/neg_lbl refs: (1, TS, 1) int32 label tiles (-100 = ignore).
    outputs: (1, 1, 1) f32 per-batch accumulators (same block for all s).
    """
    s_idx = pl.program_id(1)

    @pl.when(s_idx == 0)
    def _init():
        pos_out_ref[...] = jnp.zeros_like(pos_out_ref)
        neg_out_ref[...] = jnp.zeros_like(neg_out_ref)

    def _masked_kl_sum(policy, reference, labels):
        p = policy.astype(jnp.float32)       # (1, TS, V)
        r = reference.astype(jnp.float32)    # (1, TS, V)

        # Policy log-softmax (only the logsumexp is needed).
        p_shift = p - jnp.max(p, axis=-1, keepdims=True)
        p_lse = jnp.log(jnp.sum(jnp.exp(p_shift), axis=-1, keepdims=True))
        p_logp = p_shift - p_lse

        # Reference: exponentiate ONCE, reuse for probs and log-probs.
        r_shift = r - jnp.max(r, axis=-1, keepdims=True)
        r_exp = jnp.exp(r_shift)
        r_z = jnp.sum(r_exp, axis=-1, keepdims=True)
        r_logp = r_shift - jnp.log(r_z)
        r_prob = r_exp * (1.0 / r_z)          # exact divide (keeps 1e-5 accuracy)

        # F.kl_div(input=p_logp, target=r_logp, log_target=True).sum(-1)
        kl = jnp.sum(r_prob * (r_logp - p_logp), axis=-1, keepdims=True)  # (1,TS,1)
        mask = (labels != -100).astype(jnp.float32)                       # (1,TS,1)
        return jnp.sum(kl * mask)                                         # scalar

    pos_out_ref[...] += _masked_kl_sum(pp_ref[...], rp_ref[...], pos_lbl_ref[...])
    neg_out_ref[...] += _masked_kl_sum(pn_ref[...], rn_ref[...], neg_lbl_ref[...])


def _vmem_capacity_bytes():
    """Per-core VMEM capacity; conservative (v7x = 64 MiB) fallback."""
    try:
        info = pltpu.get_tpu_info()
        cap = getattr(info, "vmem_capacity_bytes", None)
        if cap:
            return int(cap)
    except Exception:
        pass
    return 64 * 1024 * 1024


def _choose_seq_tile(S, V, itemsize, budget_bytes):
    """Largest TS dividing S with TS % 8 == 0 (or TS == S) fitting the budget."""
    # 4 logit inputs x 2 pipeline buffers per row; labels/outputs negligible.
    bytes_per_row = 8 * V * itemsize
    max_rows = max(1, budget_bytes // bytes_per_row)
    if S <= max_rows:
        return S
    candidates = [d for d in range(8, S + 1, 8) if S % d == 0 and d <= max_rows]
    if candidates:
        return max(candidates)
    return S  # no aligned divisor fits the budget; fall back to the full seq


def kl_pairs_loss(*, policy_pos_logits, policy_neg_logits,
                  reference_pos_logits, reference_neg_logits,
                  pos_labels, neg_labels,
                  pn_ratio: float = 0.5, penalty: float = 0.2,
                  seq_tile=None):
    """Pallas implementation of KLPairsLoss.forward.

    Returns (loss, metrics) with metrics = {"kl/pos": ..., "kl/neg": ...}.
    Logits may be f32 or bf16; math inside the kernel is always f32.
    """
    B, S, V = policy_pos_logits.shape
    itemsize = jnp.dtype(policy_pos_logits.dtype).itemsize

    vmem_cap = _vmem_capacity_bytes()
    tile_budget = vmem_cap // 2                     # ~32 MiB v7x, ~64 MiB v5e/v6e
    vmem_limit = int(min(vmem_cap * 0.7, 100 * 1024 * 1024))

    ts = _choose_seq_tile(S, V, itemsize, tile_budget) if seq_tile is None \
        else int(seq_tile)
    assert S % ts == 0 and (ts % 8 == 0 or ts == S), \
        f"seq tile {ts} incompatible with S={S}"
    num_s = S // ts

    pos_lbl = pos_labels.astype(jnp.int32).reshape(B, S, 1)
    neg_lbl = neg_labels.astype(jnp.int32).reshape(B, S, 1)

    logit_spec = pl.BlockSpec((1, ts, V), lambda b, s: (b, s, 0))
    label_spec = pl.BlockSpec((1, ts, 1), lambda b, s: (b, s, 0))
    out_spec = pl.BlockSpec((1, 1, 1), lambda b, s: (b, 0, 0))

    n_elems = B * S * V
    cost = pl.CostEstimate(
        flops=24 * n_elems,
        transcendentals=4 * n_elems,
        bytes_accessed=4 * n_elems * itemsize + 2 * B * S * 4 + 2 * B * 4)

    pos_sums, neg_sums = pl.pallas_call(
        _kl_pairs_kernel,
        grid=(B, num_s),
        in_specs=[logit_spec, logit_spec, logit_spec, logit_spec,
                  label_spec, label_spec],
        out_specs=(out_spec, out_spec),
        out_shape=(jax.ShapeDtypeStruct((B, 1, 1), jnp.float32),
                   jax.ShapeDtypeStruct((B, 1, 1), jnp.float32)),
        compiler_params=pltpu.CompilerParams(
            dimension_semantics=("parallel", "arbitrary"),
            vmem_limit_bytes=vmem_limit),
        cost_estimate=cost,
    )(policy_pos_logits, policy_neg_logits,
      reference_pos_logits, reference_neg_logits,
      pos_lbl, neg_lbl)

    pos_kl = pos_sums.reshape(B).mean()
    neg_kl = neg_sums.reshape(B).mean()
    loss = (pos_kl * pn_ratio + neg_kl * (1.0 - pn_ratio)) * penalty
    metrics = {"kl/pos": jax.lax.stop_gradient(pos_kl),
               "kl/neg": jax.lax.stop_gradient(neg_kl)}
    return loss, metrics


def _reference_loss(policy_pos, policy_neg, ref_pos, ref_neg,
                    pos_labels, neg_labels, pn_ratio=0.5, penalty=0.2):
    """Pure-JAX reference mirroring the PyTorch module semantics."""
    def ls(x):
        return jax.nn.log_softmax(x.astype(jnp.float32), axis=-1)

    pp, pn, rp, rn = ls(policy_pos), ls(policy_neg), ls(ref_pos), ls(ref_neg)
    pos_mask = (pos_labels != -100).astype(jnp.float32)
    neg_mask = (neg_labels != -100).astype(jnp.float32)
    pos_kl = jnp.sum(jnp.exp(rp) * (rp - pp), axis=-1)
    neg_kl = jnp.sum(jnp.exp(rn) * (rn - pn), axis=-1)
    pos_kl = jnp.sum(pos_kl * pos_mask, axis=-1).mean()
    neg_kl = jnp.sum(neg_kl * neg_mask, axis=-1).mean()
    loss = (pos_kl * pn_ratio + neg_kl * (1.0 - pn_ratio)) * penalty
    return loss, pos_kl, neg_kl


if __name__ == "__main__":
    B, S, V = 2, 16, 128  # batch, seq, vocab (small, but exercises S-tiling)

    key = jax.random.PRNGKey(0)
    k = jax.random.split(key, 8)

    policy_pos = jax.random.normal(k[0], (B, S, V), dtype=jnp.float32)
    policy_neg = jax.random.normal(k[1], (B, S, V), dtype=jnp.float32)
    ref_pos = jax.random.normal(k[2], (B, S, V), dtype=jnp.float32)
    ref_neg = jax.random.normal(k[3], (B, S, V), dtype=jnp.float32)

    pos_labels = jax.random.randint(k[4], (B, S), 0, V, dtype=jnp.int32)
    neg_labels = jax.random.randint(k[5], (B, S), 0, V, dtype=jnp.int32)
    # Sprinkle in ignore_index=-100 entries (padded label positions).
    pos_labels = jnp.where(jax.random.uniform(k[6], (B, S)) < 0.3, -100, pos_labels)
    neg_labels = jnp.where(jax.random.uniform(k[7], (B, S)) < 0.3, -100, neg_labels)

    ref_loss, ref_pos_kl, ref_neg_kl = _reference_loss(
        policy_pos, policy_neg, ref_pos, ref_neg, pos_labels, neg_labels)

    # --- f32 inputs, forced multi-tile sequence path (TS=8 -> 2 seq tiles).
    loss, metrics = kl_pairs_loss(
        policy_pos_logits=policy_pos, policy_neg_logits=policy_neg,
        reference_pos_logits=ref_pos, reference_neg_logits=ref_neg,
        pos_labels=pos_labels, neg_labels=neg_labels,
        pn_ratio=0.5, penalty=0.2, seq_tile=8)
    jax.block_until_ready(loss)
    np.testing.assert_allclose(np.asarray(loss), np.asarray(ref_loss),
                               rtol=1e-5, atol=1e-5)
    np.testing.assert_allclose(np.asarray(metrics["kl/pos"]),
                               np.asarray(ref_pos_kl), rtol=1e-5, atol=1e-5)
    np.testing.assert_allclose(np.asarray(metrics["kl/neg"]),
                               np.asarray(ref_neg_kl), rtol=1e-5, atol=1e-5)

    # --- f32 inputs, automatic tile size (single tile at these toy shapes).
    loss_auto, _ = kl_pairs_loss(
        policy_pos_logits=policy_pos, policy_neg_logits=policy_neg,
        reference_pos_logits=ref_pos, reference_neg_logits=ref_neg,
        pos_labels=pos_labels, neg_labels=neg_labels)
    jax.block_until_ready(loss_auto)
    np.testing.assert_allclose(np.asarray(loss_auto), np.asarray(ref_loss),
                               rtol=1e-5, atol=1e-5)

    # --- bf16 inputs (halves HBM traffic); math stays f32 inside the kernel.
    pp_bf, pn_bf = policy_pos.astype(jnp.bfloat16), policy_neg.astype(jnp.bfloat16)
    rp_bf, rn_bf = ref_pos.astype(jnp.bfloat16), ref_neg.astype(jnp.bfloat16)
    loss_bf, metrics_bf = kl_pairs_loss(
        policy_pos_logits=pp_bf, policy_neg_logits=pn_bf,
        reference_pos_logits=rp_bf, reference_neg_logits=rn_bf,
        pos_labels=pos_labels, neg_labels=neg_labels, seq_tile=8)
    jax.block_until_ready(loss_bf)
    ref_loss_bf, ref_pos_bf, ref_neg_bf = _reference_loss(
        pp_bf, pn_bf, rp_bf, rn_bf, pos_labels, neg_labels)
    np.testing.assert_allclose(np.asarray(loss_bf), np.asarray(ref_loss_bf),
                               rtol=1e-4, atol=1e-4)
    np.testing.assert_allclose(np.asarray(metrics_bf["kl/pos"]),
                               np.asarray(ref_pos_bf), rtol=1e-4, atol=1e-4)
    np.testing.assert_allclose(np.asarray(metrics_bf["kl/neg"]),
                               np.asarray(ref_neg_bf), rtol=1e-4, atol=1e-4)

    print("KERNEL_OK")
</pallas_src>

<mosaic_0001>
module attributes {stable_mosaic.version = 11 : i64} {
  func.func @_kl_pairs_kernel(%arg0: i32, %arg1: i32, %arg2: memref<1x8x128xf32, #tpu.memory_space<vmem>>, %arg3: memref<1x8x128xf32, #tpu.memory_space<vmem>>, %arg4: memref<1x8x128xf32, #tpu.memory_space<vmem>>, %arg5: memref<1x8x128xf32, #tpu.memory_space<vmem>>, %arg6: memref<1x8x1xi32, #tpu.memory_space<vmem>>, %arg7: memref<1x8x1xi32, #tpu.memory_space<vmem>>, %arg8: memref<1x1x1xf32, #tpu.memory_space<vmem>>, %arg9: memref<1x1x1xf32, #tpu.memory_space<vmem>>) attributes {dimension_semantics = [#tpu.dimension_semantics<parallel>, #tpu.dimension_semantics<arbitrary>], iteration_bounds = array<i64: 2, 2>, scalar_prefetch = 0 : i64, scratch_operands = 0 : i64, tpu.core_type = #tpu.core_type<tc>, window_params = [{transform_indices = @transform_0, window_bounds = array<i64: 1, 8, 128>}, {transform_indices = @transform_1, window_bounds = array<i64: 1, 8, 128>}, {transform_indices = @transform_2, window_bounds = array<i64: 1, 8, 128>}, {transform_indices = @transform_3, window_bounds = array<i64: 1, 8, 128>}, {transform_indices = @transform_4, window_bounds = array<i64: 1, 8, 1>}, {transform_indices = @transform_5, window_bounds = array<i64: 1, 8, 1>}, {transform_indices = @transform_6, window_bounds = array<i64: 1, 1, 1>}, {transform_indices = @transform_7, window_bounds = array<i64: 1, 1, 1>}]} {
    %c0_i32 = arith.constant 0 : i32
    %0 = arith.cmpi eq, %arg1, %c0_i32 : i32
    %1 = arith.extui %0 : i1 to i32
    %c0_i32_0 = arith.constant 0 : i32
    %2 = arith.cmpi ne, %1, %c0_i32_0 : i32
    scf.if %2 {
      %cst_44 = arith.constant 0.000000e+00 : f32
      %91 = vector.broadcast %cst_44 : f32 to vector<1x1x1xf32>
      %c0_45 = arith.constant 0 : index
      %c0_46 = arith.constant 0 : index
      %c0_47 = arith.constant 0 : index
      %92 = vector.load %arg8[%c0_45, %c0_46, %c0_47] : memref<1x1x1xf32, #tpu.memory_space<vmem>>, vector<1x1x1xf32>
      tpu.vector_store %arg8[%c0_45, %c0_46, %c0_47], %91 {strides = array<i32>} : memref<1x1x1xf32, #tpu.memory_space<vmem>>, vector<1x1x1xf32>,
      %cst_48 = arith.constant 0.000000e+00 : f32
      %93 = vector.broadcast %cst_48 : f32 to vector<1x1x1xf32>
      %c0_49 = arith.constant 0 : index
      %c0_50 = arith.constant 0 : index
      %c0_51 = arith.constant 0 : index
      %94 = vector.load %arg9[%c0_49, %c0_50, %c0_51] : memref<1x1x1xf32, #tpu.memory_space<vmem>>, vector<1x1x1xf32>
      tpu.vector_store %arg9[%c0_49, %c0_50, %c0_51], %93 {strides = array<i32>} : memref<1x1x1xf32, #tpu.memory_space<vmem>>, vector<1x1x1xf32>,
    } else {
    }
    %c0 = arith.constant 0 : index
    %c0_1 = arith.constant 0 : index
    %c0_2 = arith.constant 0 : index
    %3 = vector.load %arg8[%c0, %c0_1, %c0_2] : memref<1x1x1xf32, #tpu.memory_space<vmem>>, vector<1x1x1xf32>
    %c0_3 = arith.constant 0 : index
    %c0_4 = arith.constant 0 : index
    %c0_5 = arith.constant 0 : index
    %4 = vector.load %arg2[%c0_3, %c0_4, %c0_5] : memref<1x8x128xf32, #tpu.memory_space<vmem>>, vector<1x8x128xf32>
    %c0_6 = arith.constant 0 : index
    %c0_7 = arith.constant 0 : index
    %c0_8 = arith.constant 0 : index
    %5 = vector.load %arg4[%c0_6, %c0_7, %c0_8] : memref<1x8x128xf32, #tpu.memory_space<vmem>>, vector<1x8x128xf32>
    %c0_9 = arith.constant 0 : index
    %c0_10 = arith.constant 0 : index
    %c0_11 = arith.constant 0 : index
    %6 = vector.load %arg6[%c0_9, %c0_10, %c0_11] : memref<1x8x1xi32, #tpu.memory_space<vmem>>, vector<1x8x1xi32>
    %cst = arith.constant dense<0xFF800000> : vector<1x8xf32>
    %7 = vector.multi_reduction <maximumf>, %4, %cst [2] : vector<1x8x128xf32> to vector<1x8xf32>
    %8 = vector.shape_cast %7 : vector<1x8xf32> to vector<1x8x1xf32>
    %9 = vector.broadcast %8 : vector<1x8x1xf32> to vector<1x8x128xf32>
    %10 = arith.subf %4, %9 : vector<1x8x128xf32>
    %11 = math.exp %10 : vector<1x8x128xf32>
    %cst_12 = arith.constant dense<0.000000e+00> : vector<1x8xf32>
    %12 = vector.multi_reduction <add>, %11, %cst_12 [2] : vector<1x8x128xf32> to vector<1x8xf32>
    %13 = vector.shape_cast %12 : vector<1x8xf32> to vector<1x8x1xf32>
    %14 = math.log %13 : vector<1x8x1xf32>
    %15 = vector.broadcast %14 : vector<1x8x1xf32> to vector<1x8x128xf32>
    %16 = arith.subf %10, %15 : vector<1x8x128xf32>
    %cst_13 = arith.constant dense<0xFF800000> : vector<1x8xf32>
    %17 = vector.multi_reduction <maximumf>, %5, %cst_13 [2] : vector<1x8x128xf32> to vector<1x8xf32>
    %18 = vector.shape_cast %17 : vector<1x8xf32> to vector<1x8x1xf32>
    %19 = vector.broadcast %18 : vector<1x8x1xf32> to vector<1x8x128xf32>
    %20 = arith.subf %5, %19 : vector<1x8x128xf32>
    %21 = math.exp %20 : vector<1x8x128xf32>
    %cst_14 = arith.constant dense<0.000000e+00> : vector<1x8xf32>
    %22 = vector.multi_reduction <add>, %21, %cst_14 [2] : vector<1x8x128xf32> to vector<1x8xf32>
    %23 = vector.shape_cast %22 : vector<1x8xf32> to vector<1x8x1xf32>
    %24 = math.log %23 : vector<1x8x1xf32>
    %25 = vector.broadcast %24 : vector<1x8x1xf32> to vector<1x8x128xf32>
    %26 = arith.subf %20, %25 : vector<1x8x128xf32>
    %cst_15 = arith.constant 1.000000e+00 : f32
    %27 = vector.broadcast %cst_15 : f32 to vector<1x8x1xf32>
    %28 = arith.divf %27, %23 : vector<1x8x1xf32>
    %29 = vector.broadcast %28 : vector<1x8x1xf32> to vector<1x8x128xf32>
    %30 = arith.mulf %21, %29 : vector<1x8x128xf32>
    %31 = arith.subf %26, %16 : vector<1x8x128xf32>
    %32 = arith.mulf %30, %31 : vector<1x8x128xf32>
    %cst_16 = arith.constant dense<0.000000e+00> : vector<1x8xf32>
    %33 = vector.multi_reduction <add>, %32, %cst_16 [2] : vector<1x8x128xf32> to vector<1x8xf32>
    %34 = vector.shape_cast %33 : vector<1x8xf32> to vector<1x8x1xf32>
    %c-100_i32 = arith.constant -100 : i32
    %35 = vector.broadcast %c-100_i32 : i32 to vector<1x8x1xi32>
    %36 = arith.cmpi ne, %6, %35 : vector<1x8x1xi32>
    %37 = arith.extui %36 : vector<1x8x1xi1> to vector<1x8x1xi32>
    %38 = arith.sitofp %37 : vector<1x8x1xi32> to vector<1x8x1xf32>
    %39 = arith.mulf %34, %38 : vector<1x8x1xf32>
    %40 = vector.shape_cast %39 : vector<1x8x1xf32> to vector<1x1x8x1xf32>
    %cst_17 = arith.constant dense<0.000000e+00> : vector<1xf32>
    %41 = vector.multi_reduction <add>, %40, %cst_17 [1, 2, 3] : vector<1x1x8x1xf32> to vector<1xf32>
    %42 = vector.shape_cast %41 : vector<1xf32> to vector<1x1x1x1xf32>
    %43 = vector.extract %42[0, 0, 0, 0] : f32 from vector<1x1x1x1xf32>
    %44 = vector.broadcast %43 : f32 to vector<1x1x1xf32>
    %45 = arith.addf %3, %44 : vector<1x1x1xf32>
    %c0_18 = arith.constant 0 : index
    %c0_19 = arith.constant 0 : index
    %c0_20 = arith.constant 0 : index
    %46 = vector.load %arg8[%c0_18, %c0_19, %c0_20] : memref<1x1x1xf32, #tpu.memory_space<vmem>>, vector<1x1x1xf32>
    tpu.vector_store %arg8[%c0_18, %c0_19, %c0_20], %45 {strides = array<i32>} : memref<1x1x1xf32, #tpu.memory_space<vmem>>, vector<1x1x1xf32>,
    %c0_21 = arith.constant 0 : index
    %c0_22 = arith.constant 0 : index
    %c0_23 = arith.constant 0 : index
    %47 = vector.load %arg9[%c0_21, %c0_22, %c0_23] : memref<1x1x1xf32, #tpu.memory_space<vmem>>, vector<1x1x1xf32>
    %c0_24 = arith.constant 0 : index
    %c0_25 = arith.constant 0 : index
    %c0_26 = arith.constant 0 : index
    %48 = vector.load %arg3[%c0_24, %c0_25, %c0_26] : memref<1x8x128xf32, #tpu.memory_space<vmem>>, vector<1x8x128xf32>
    %c0_27 = arith.constant 0 : index
    %c0_28 = arith.constant 0 : index
    %c0_29 = arith.constant 0 : index
    %49 = vector.load %arg5[%c0_27, %c0_28, %c0_29] : memref<1x8x128xf32, #tpu.memory_space<vmem>>, vector<1x8x128xf32>
    %c0_30 = arith.constant 0 : index
    %c0_31 = arith.constant 0 : index
    %c0_32 = arith.constant 0 : index
    %50 = vector.load %arg7[%c0_30, %c0_31, %c0_32] : memref<1x8x1xi32, #tpu.memory_space<vmem>>, vector<1x8x1xi32>
    %cst_33 = arith.constant dense<0xFF800000> : vector<1x8xf32>
    %51 = vector.multi_reduction <maximumf>, %48, %cst_33 [2] : vector<1x8x128xf32> to vector<1x8xf32>
    %52 = vector.shape_cast %51 : vector<1x8xf32> to vector<1x8x1xf32>
    %53 = vector.broadcast %52 : vector<1x8x1xf32> to vector<1x8x128xf32>
    %54 = arith.subf %48, %53 : vector<1x8x128xf32>
    %55 = math.exp %54 : vector<1x8x128xf32>
    %cst_34 = arith.constant dense<0.000000e+00> : vector<1x8xf32>
    %56 = vector.multi_reduction <add>, %55, %cst_34 [2] : vector<1x8x128xf32> to vector<1x8xf32>
    %57 = vector.shape_cast %56 : vector<1x8xf32> to vector<1x8x1xf32>
    %58 = math.log %57 : vector<1x8x1xf32>
    %59 = vector.broadcast %58 : vector<1x8x1xf32> to vector<1x8x128xf32>
    %60 = arith.subf %54, %59 : vector<1x8x128xf32>
    %cst_35 = arith.constant dense<0xFF800000> : vector<1x8xf32>
    %61 = vector.multi_reduction <maximumf>, %49, %cst_35 [2] : vector<1x8x128xf32> to vector<1x8xf32>
    %62 = vector.shape_cast %61 : vector<1x8xf32> to vector<1x8x1xf32>
    %63 = vector.broadcast %62 : vector<1x8x1xf32> to vector<1x8x128xf32>
    %64 = arith.subf %49, %63 : vector<1x8x128xf32>
    %65 = math.exp %64 : vector<1x8x128xf32>
    %cst_36 = arith.constant dense<0.000000e+00> : vector<1x8xf32>
    %66 = vector.multi_reduction <add>, %65, %cst_36 [2] : vector<1x8x128xf32> to vector<1x8xf32>
    %67 = vector.shape_cast %66 : vector<1x8xf32> to vector<1x8x1xf32>
    %68 = math.log %67 : vector<1x8x1xf32>
    %69 = vector.broadcast %68 : vector<1x8x1xf32> to vector<1x8x128xf32>
    %70 = arith.subf %64, %69 : vector<1x8x128xf32>
    %cst_37 = arith.constant 1.000000e+00 : f32
    %71 = vector.broadcast %cst_37 : f32 to vector<1x8x1xf32>
    %72 = arith.divf %71, %67 : vector<1x8x1xf32>
    %73 = vector.broadcast %72 : vector<1x8x1xf32> to vector<1x8x128xf32>
    %74 = arith.mulf %65, %73 : vector<1x8x128xf32>
    %75 = arith.subf %70, %60 : vector<1x8x128xf32>
    %76 = arith.mulf %74, %75 : vector<1x8x128xf32>
    %cst_38 = arith.constant dense<0.000000e+00> : vector<1x8xf32>
    %77 = vector.multi_reduction <add>, %76, %cst_38 [2] : vector<1x8x128xf32> to vector<1x8xf32>
    %78 = vector.shape_cast %77 : vector<1x8xf32> to vector<1x8x1xf32>
    %c-100_i32_39 = arith.constant -100 : i32
    %79 = vector.broadcast %c-100_i32_39 : i32 to vector<1x8x1xi32>
    %80 = arith.cmpi ne, %50, %79 : vector<1x8x1xi32>
    %81 = arith.extui %80 : vector<1x8x1xi1> to vector<1x8x1xi32>
    %82 = arith.sitofp %81 : vector<1x8x1xi32> to vector<1x8x1xf32>
    %83 = arith.mulf %78, %82 : vector<1x8x1xf32>
    %84 = vector.shape_cast %83 : vector<1x8x1xf32> to vector<1x1x8x1xf32>
    %cst_40 = arith.constant dense<0.000000e+00> : vector<1xf32>
    %85 = vector.multi_reduction <add>, %84, %cst_40 [1, 2, 3] : vector<1x1x8x1xf32> to vector<1xf32>
    %86 = vector.shape_cast %85 : vector<1xf32> to vector<1x1x1x1xf32>
    %87 = vector.extract %86[0, 0, 0, 0] : f32 from vector<1x1x1x1xf32>
    %88 = vector.broadcast %87 : f32 to vector<1x1x1xf32>
    %89 = arith.addf %47, %88 : vector<1x1x1xf32>
    %c0_41 = arith.constant 0 : index
    %c0_42 = arith.constant 0 : index
    %c0_43 = arith.constant 0 : index
    %90 = vector.load %arg9[%c0_41, %c0_42, %c0_43] : memref<1x1x1xf32, #tpu.memory_space<vmem>>, vector<1x1x1xf32>
    tpu.vector_store %arg9[%c0_41, %c0_42, %c0_43], %89 {strides = array<i32>} : memref<1x1x1xf32, #tpu.memory_space<vmem>>, vector<1x1x1xf32>,
    return
  }
  func.func @transform_0(%arg0: i32, %arg1: i32) -> (i32, i32, i32) {
    %c0_i32 = arith.constant 0 : i32
    %c0_i32_0 = arith.constant 0 : i32
    return %arg0, %arg1, %c0_i32 : i32, i32, i32
  }
  func.func @transform_1(%arg0: i32, %arg1: i32) -> (i32, i32, i32) {
    %c0_i32 = arith.constant 0 : i32
    %c0_i32_0 = arith.constant 0 : i32
    return %arg0, %arg1, %c0_i32 : i32, i32, i32
  }
  func.func @transform_2(%arg0: i32, %arg1: i32) -> (i32, i32, i32) {
    %c0_i32 = arith.constant 0 : i32
    %c0_i32_0 = arith.constant 0 : i32
    return %arg0, %arg1, %c0_i32 : i32, i32, i32
  }
  func.func @transform_3(%arg0: i32, %arg1: i32) -> (i32, i32, i32) {
    %c0_i32 = arith.constant 0 : i32
    %c0_i32_0 = arith.constant 0 : i32
    return %arg0, %arg1, %c0_i32 : i32, i32, i32
  }
  func.func @transform_4(%arg0: i32, %arg1: i32) -> (i32, i32, i32) {
    %c0_i32 = arith.constant 0 : i32
    %c0_i32_0 = arith.constant 0 : i32
    return %arg0, %arg1, %c0_i32 : i32, i32, i32
  }
  func.func @transform_5(%arg0: i32, %arg1: i32) -> (i32, i32, i32) {
    %c0_i32 = arith.constant 0 : i32
    %c0_i32_0 = arith.constant 0 : i32
    return %arg0, %arg1, %c0_i32 : i32, i32, i32
  }
  func.func @transform_6(%arg0: i32, %arg1: i32) -> (i32, i32, i32) {
    %c0_i32 = arith.constant 0 : i32
    %c0_i32_0 = arith.constant 0 : i32
    %c0_i32_1 = arith.constant 0 : i32
    return %arg0, %c0_i32, %c0_i32_0 : i32, i32, i32
  }
  func.func @transform_7(%arg0: i32, %arg1: i32) -> (i32, i32, i32) {
    %c0_i32 = arith.constant 0 : i32
    %c0_i32_0 = arith.constant 0 : i32
    %c0_i32_1 = arith.constant 0 : i32
    return %arg0, %c0_i32, %c0_i32_0 : i32, i32, i32
  }
}

</mosaic_0001>

<bundles_post_ra>
// kernel: tpu_custom_call.1
= control target key start
LH: loop header
LB: loop body
LE: loop exit
PB: predicated region body
PF: predicated region fallthrough
CT: control target
= control target key end

     0   :  { %s1293_s0 = inlined_call_operand.vmem [shape: f32[2,16,128], index: 0, kind: input, shape index: {}]   ;;  %s1294_s1 = inlined_call_operand.vmem [shape: f32[2,16,128], index: 1, kind: input, shape index: {}]   ;;  %s1295_s2 = inlined_call_operand.hbm [shape: f32[2,16,128], index: 2, kind: input, shape index: {}]   ;;  %s1296_s3 = inlined_call_operand.hbm [shape: f32[2,16,128], index: 3, kind: input, shape index: {}]   ;;  %s1297_s4 = inlined_call_operand.vmem [shape: s32[2,16,1], index: 4, kind: input, shape index: {}]   ;;  %s1298_s5 = inlined_call_operand.vmem [shape: s32[2,16,1], index: 5, kind: input, shape index: {}]   ;;  %s1299_s6 = inlined_call_operand.vmem [shape: f32[2,1,1], index: 6, kind: output, shape index: {0}]   ;;  %s1300_s7 = inlined_call_operand.vmem [shape: f32[2,1,1], index: 7, kind: output, shape index: {1}]  }
   0x1   :  { %1303 = sst [smem:[#allocation10_spill]] %s1295_s2 }
   0x2   :  { %1304 = sst [smem:[#allocation11_spill]] %s1297_s4 }
   0x3   :  { %1305 = sst [smem:[#allocation12_spill]] %s1298_s5 }
   0x4   :  { %13 = vsyncpa [#allocation3], 0 }
   0x5   :  { %15 = vsyncpa [#allocation3 + $0x1], 0 }
   0x6   :  { %16 = vsyncpa [#allocation5], 0 }
   0x7   :  { %18 = vsyncpa [#allocation5 + $0x1], 0  ;;  %s1113_s24 = smov 0   ;;  %s1115_s25 = smov 0  }
   0x8   :  { %s1117_s26 = smov 0   ;;  %s1119_s27 = smov 0  }
   0x9   :  { %s1121_s28 = smov 0   ;;  %s1123_s29 = smov 0  }
   0xa   :  { %s1125_s30 = smov 0   ;;  %s1127_s8 = smov 0  }
   0xb LB: > { %s811_s9 = sadd.s32 4294967295, %s1069_s8   ;;  %s33_s10 = sadd.s32 1, %s1061_s29  ;;  %s1069_s8 = sphi %s1127_s8, %s24_s8   ;;  %s1065_s30 = sphi %s1125_s30, %s1324_s30   ;;  %s1061_s29 = sphi %s1123_s29, %s1323_s29   ;;  %s1057_s28 = sphi %s1121_s28, %s1322_s28   ;;  %s1053_s27 = sphi %s1119_s27, %s1321_s27   ;;  %s1049_s26 = sphi %s1117_s26, %s1320_s26   ;;  %s1045_s25 = sphi %s1115_s25, %s1319_s25   ;;  %s1041_s24 = sphi %s1113_s24, %s1318_s24  }
   0xc   : > { %p34_p0 = scmp.ge.s32.totalorder %s33_s10, 2  ;;  %s36_s11 = sadd.s32 1, %s1065_s30 }
   0xd   : > { %s101_s12 = sadd.s32 1, %s1049_s26  ;;  %p108_p1 = scmp.ne.s32.totalorder %s1049_s26, %s1045_s25 }
   0xe   : > { %s1326_s10 = smov (%p34_p0, %s33_s10), 0  ;;  %s1328_s11 = smov (!%p34_p0, %s36_s11), %s1065_s30 }
   0xf   : > { %1306 = sst [smem:[#allocation8_spill]] %s1326_s10  ;;  %s97_s13 = ssub.s32 %s1061_s29, %s1326_s10 }
  0x10   : > { %p109_p2 = scmp.eq.s32.totalorder %s1069_s8, 0  ;;  %p38_p3 = scmp.ge.s32.totalorder %s1328_s11, 2 }
  0x11   : > { %p114_p4 = scmp.ne.s32.totalorder %s1045_s25, %s1041_s24  ;;  %p115_p6 = scmp.eq.s32.totalorder %s811_s9, 0 }
  0x12   : > { %p1164_p5 = por %p109_p2, %p108_p1  ;;  %s1330_s11 = smov (%p38_p3, %s1328_s11), 0 }
  0x13   : > { %1308 = sst [smem:[#allocation9_spill]] %s1330_s11  ;;  %p1170_p7 = por %p115_p6, %p114_p4 }
  0x14   : > { %s96_s16 = ssub.s32 %s1065_s30, %s1330_s11  ;;  %p852_p8 = scmp.lt.s32.totalorder %s1069_s8, 4 }
  0x15   : > { %s98_s17 = sor.u32 %s97_s13, %s96_s16  ;;  %s296_s18 = sand.u32 1, %s1049_s26  }
  0x16   : > { %p99_p9 = scmp.eq.s32.totalorder %s98_s17, 0  ;;  %s815_s19 = sshll.u32 %s296_s18, 3 }
  0x17   : > { %s816_s20 = sshll.u32 %s1065_s30, 1  ;;  %s300_s24 = scalar_lea.vmem [#allocation2], %s815_s19 }
  0x18   : > { %s1180_s21 = scalar_select %p99_p9, %s1049_s26, %s101_s12  }
  0x19   : > { %s304_s22 = sadd.s32 %s1061_s29, %s816_s20  ;;  %s310_s9 = sshll.u32 %s300_s24, 4  ;;  %s311_s9 = int_to_ptr.vmem [resolvable:$true] %s310_s9 }
  0x1a   : > { %s817_s23 = sshll.u32 %s304_s22, 3  ;;  %s1310_s2 = sld [smem:[#allocation10_spill]] }
  0x1b   : > { %p1190_p10 = pnand %p852_p8, %p1164_p5  ;;  %p821_p11 = scmp.ge.s32.totalorder %s1069_s8, 1 }
  0x1c   : > { %p358_p12 = scmp.lt.s32.totalorder %s1069_s8, 5  ;;  %s297_s12 = scalar_lea.sflag [#allocation3], %s296_s18 }
  0x1d   : > { %s327_s10 = scalar_lea.hbm %s1296_s3, %s817_s23  ;;  %s321_s14 = scalar_lea.vmem [#allocation4], %s815_s19 }
  0x1e   : > { %p359_p13 = pnand %p821_p11, %p358_p12  ;;  %s331_s17 = sshll.u32 %s321_s14, 4  ;;  %s332_s17 = int_to_ptr.vmem [resolvable:$true] %s331_s17 }
  0x1f   : > { %s318_s20 = scalar_lea.sflag [#allocation5], %s296_s18  ;;  %s364_s22 = sand.u32 (!%p359_p13), 1, %s1045_s25  }
  0x20   : > { %s306_s4 = scalar_lea.hbm %s1310_s2, %s817_s23  ;;  %362 = sbr.rel (%p359_p13) target bundleno = 631 (0x277), region = 44 }
  0x21   : > { %s308_s11 = sshll.u32 %s306_s4, 4  ;;  %s329_s4 = sshll.u32 %s327_s10, 4  ;;  %s309_s11 = int_to_ptr.hbm [resolvable:$true] %s308_s11  ;;  %s330_s4 = int_to_ptr.hbm [resolvable:$true] %s329_s4 }
  0x22   : > { %848 = dma.hbm_to_vmem [thread:$0]  (!%p1190_p10), %s309_s11, 128, %s311_s9, %s297_s12  }
  0x23   : > { %851 = dma.hbm_to_vmem [thread:$0]  (!%p1190_p10), %s330_s4, 128, %s332_s17, %s318_s20  }
  0x24   : > { %s822_s24 = sshll.u32 (!%p359_p13), %s364_s22, 3  ;;  %s365_s2 = scalar_lea.sflag (!%p359_p13), [#allocation3], %s364_s22 }
  0x25   : > { %s368_s11 = scalar_lea.vmem [#allocation2], %s822_s24 }
  0x26   : > { %1032 = dma.done.wait (%p1170_p7), %s365_s2, 128  }
  0x27   : > { %1034 = vsyncadd (%p1170_p7), %s365_s2, 4294967168  ;;  %s375_s19 = scalar_lea.sflag [#allocation5], %s364_s22  ;;  %s378_s23 = scalar_lea.vmem [#allocation4], %s822_s24 }
  0x28   : > { %1036 = dma.done.wait (%p1170_p7), %s375_s19, 128  }
  0x29   : > { %1038 = vsyncadd (%p1170_p7), %s375_s19, 4294967168  ;;  %p448_p0 = scmp.lt.s32.totalorder %s1057_s28, 1  ;;  %p450_p1 = scmp.lt.s32.totalorder %s1053_s27, 1 }
  0x2a   : > { %s1312_s13 = sld [smem:[#allocation11_spill]]  ;;  %p832_p2 = scmp.ne.s32.totalorder %s1053_s27, 0 }
  0x2b   : > { %s1332_s28 = smov (!%p448_p0, %s1057_s28), 1 }
  0x2c   : > { %s451_s18 = scalar_select %p450_p1, %s1053_s27, 1 }
  0x2d   : > { %s824_s9 = sshll.u32 %s1332_s28, 1  ;;  %s1219_s2 = scalar_lea.vmem %s1299_s6, %s1332_s28 }
  0x2e   : > { %s453_s16 = sadd.s32 %s824_s9, %s451_s18  ;;  %s1224_s15 = scalar_lea.vmem %s1300_s7, %s1332_s28 }
  0x2f   : > { %s1226_s4 = sshll.u32 %s453_s16, 3  ;;  %s1313_s16 = sld [smem:[#allocation12_spill]] }
  0x30   : > { %s455_s20 = scalar_lea.vmem %s1293_s0, %s1226_s4  ;;  %s463_s19 = scalar_lea.vmem %s1294_s1, %s1226_s4 }
  0x31   : > { %s471_s12 = scalar_lea.vmem %s1312_s13, %s1226_s4  ;;  %489 = sbr.rel (%p832_p2) target bundleno = 57 (0x39), region = 56 }
  0x35   : > { %s479_s10 = scalar_lea.vmem %s1313_s16, %s1226_s4 }
  0x36   : > { %vm490_vm0 = vcmask 0   ;;  %v1071_v0 = vmov 0.0  }
  0x37   : > { %491 = vst.msk [vmem:[%s1219_s2] sm:$0x1] %vm490_vm0, %v1071_v0 }
  0x38   : > { %492 = vst.msk [vmem:[%s1224_s15] sm:$0x1] %vm490_vm0, %v1071_v0 }
  0x39 PF: > { %v495_v1 = vld [vmem:[%s368_s11] sm:$0xff]  ;;  %v558_v3 = vld [vmem:[%s378_s23] sm:$0xff]  ;;  %v1072_v0 = vmov 0.0   ;;  %vm541_vm10 = vcmask 7168   ;;  %vm554_vm12 = vcmask 0  }
  0x3a   : > { %v494_v2 = vld [vmem:[%s455_s20] sm:$0xff]  ;;  %507 = vmax.xlane.f32.xlu0 %v495_v1 }
  0x3b   : > { %497 = vmax.xlane.f32.xlu1 %v494_v2  ;;  %v557_v4 = vld [vmem:[%s463_s19] sm:$0xff] }
  0x3c   : > { %v496_v63 = vld [vmem:[%s471_s12] sm:$0xff] }
  0x3d   : > { %vm537_vm9 = vcmp.ne.s32.totalorder %v496_v63, 4294967196 }
  0x42   : > { %570 = vmax.xlane.f32.xlu0 %v558_v3 }
  0x43   : > { %560 = vmax.xlane.f32.xlu1 %v557_v4 }
  0xad   : > { %v508_v5 = vpop.xlane.xlu0 %507 }
  0xae   : > { %v498_v6 = vpop.xlane.xlu1 %497  ;;  %v509_v7 = vsub.f32 %v495_v1, %v508_v5  ;;  %v833_v1 = vsel %vm537_vm9, 1.0, %v1072_v0 }
  0xaf   : > { %v499_v8 = vsub.f32 %v494_v2, %v498_v6 }
  0xb0   : > { %v510_v9 = vmul.f32 1.442695, %v509_v7 }
  0xb1   : > { %v500_v10 = vmul.f32 1.442695, %v499_v8 }
  0xb2   : > { %919 = vpow2.f32 %v510_v9 }
  0xb3   : > { %921 = vpow2.f32 %v500_v10 }
  0xb5   : > { %v571_v11 = vpop.xlane.xlu0 %570 }
  0xb6   : > { %v561_v12 = vpop.xlane.xlu1 %560  ;;  %v1247_v13 = vsub.f32 %v558_v3, %v571_v11  ;;  %v559_v3 = vld [vmem:[%s479_s10] sm:$0xff] }
  0xb7   : > { %v1249_v14 = vsub.f32 %v557_v4, %v561_v12  ;;  %vm600_vm11 = vcmp.ne.s32.totalorder %v559_v3, 4294967196 }
  0xb8   : > { %v920_v15 = vpop.eup %919  ;;  %v573_v16 = vmul.f32 1.442695, %v1247_v13  ;;  %v834_v6 = vsel %vm600_vm11, 1.0, %v1072_v0 }
  0xb9   : > { %v563_v17 = vmul.f32 1.442695, %v1249_v14  ;;  %v922_v18 = vpop.eup %921  ;;  %512 = vadd.xlane.f32.xlu2 %v920_v15 }
  0xba   : > { %923 = vpow2.f32 %v573_v16  ;;  %502 = vadd.xlane.f32.xlu0 %v922_v18 }
  0xbb   : > { %925 = vpow2.f32 %v563_v17 }
  0xc0   : > { %v924_v19 = vpop.eup %923 }
  0xc1   : > { %v926_v20 = vpop.eup %925  ;;  %575 = vadd.xlane.f32.xlu2 %v924_v19 }
  0xc2   : > { %565 = vadd.xlane.f32.xlu1 %v926_v20 }
 0x12c   : > { %v513_v21 = vpop.xlane.xlu2 %512 }
 0x12d   : > { %927 = vrcp.f32 %v513_v21  ;;  %v503_v22 = vpop.xlane.xlu0 %502  ;;  %v528_v32 = vand.u32 2147483648, %v513_v21  ;;  %v526_v34 = vand.u32 2147483647, %v513_v21  ;;  %vm522_vm2 = vweird.f32 %v513_v21 }
 0x12e   : > { %929 = vlog2.f32 %v503_v22 }
 0x12f   : > { %931 = vlog2.f32 %v513_v21  ;;  %v529_v39 = vor.u32 1.1754944e-38, %v528_v32  ;;  %vm527_vm4 = vcmp.eq.f32.partialorder %v526_v34, 8.507059e+37 }
 0x133   : > { %v928_v23 = vpop.eup %927 }
 0x134   : > { %v930_v24 = vpop.eup %929  ;;  %v518_v25 = vmul.f32 %v928_v23, %v513_v21  ;;  %v576_v26 = vpop.xlane.xlu2 %575  ;;  %vm523_vm1 = vweird.f32 %v928_v23 }
 0x135   : > { %v932_v27 = vpop.eup %931  ;;  %v505_v28 = vmul.f32 0.6931472, %v930_v24  ;;  %933 = vrcp.f32 %v576_v26  ;;  %v566_v29 = vpop.xlane.xlu1 %565  ;;  %vm524_vm3 = vmor %vm522_vm2, %vm523_vm1  ;;  %v591_v50 = vand.u32 2147483648, %v576_v26  ;;  %v589_v53 = vand.u32 2147483647, %v576_v26 }
 0x136   : > { %v519_v30 = vsub.f32 1.0, %v518_v25  ;;  %935 = vlog2.f32 %v566_v29  ;;  %v515_v31 = vmul.f32 0.6931472, %v932_v27  ;;  %vm585_vm6 = vweird.f32 %v576_v26  ;;  %v493_v24 = vld [vmem:[%s1219_s2] sm:$0x1] }
 0x137   : > { %937 = vlog2.f32 %v576_v26  ;;  %v506_v35 = vsub.f32 %v499_v8, %v505_v28  ;;  %v592_v57 = vor.u32 1.1754944e-38, %v591_v50  ;;  %vm590_vm8 = vcmp.eq.f32.partialorder %v589_v53, 8.507059e+37  ;;  %v556_v27 = vld [vmem:[%s1224_s15] sm:$0x1] }
 0x138   : > { %v520_v33 = vmul.f32 %v928_v23, %v519_v30  ;;  %v516_v36 = vsub.f32 %v509_v7, %v515_v31 }
 0x13a   : > { %v521_v37 = vadd.f32 %v928_v23, %v520_v33  ;;  %v533_v45 = vsub.f32 %v516_v36, %v506_v35 }
 0x13b   : > { %v934_v38 = vpop.eup %933 }
 0x13c   : > { %v936_v40 = vpop.eup %935  ;;  %v581_v41 = vmul.f32 %v934_v38, %v576_v26  ;;  %v525_v42 = vsel %vm524_vm3, %v928_v23, %v521_v37  ;;  %vm586_vm5 = vweird.f32 %v934_v38 }
 0x13d   : > { %v938_v43 = vpop.eup %937  ;;  %v530_v44 = vsel %vm527_vm4, %v529_v39, %v525_v42  ;;  %v568_v47 = vmul.f32 0.6931472, %v936_v40  ;;  %vm587_vm7 = vmor %vm585_vm6, %vm586_vm5 }
 0x13e   : > { %v582_v46 = vsub.f32 1.0, %v581_v41  ;;  %v532_v48 = vmul.f32 %v920_v15, %v530_v44  ;;  %v578_v49 = vmul.f32 0.6931472, %v938_v43 }
 0x13f   : > { %v569_v54 = vsub.f32 %v1249_v14, %v568_v47 }
 0x140   : > { %v534_v51 = vmul.f32 %v533_v45, %v532_v48  ;;  %v583_v52 = vmul.f32 %v934_v38, %v582_v46  ;;  %v579_v55 = vsub.f32 %v1247_v13, %v578_v49 }
 0x142   : > { %535 = vadd.xlane.f32.xlu2 %v534_v51  ;;  %v584_v56 = vadd.f32 %v934_v38, %v583_v52  ;;  %v596_v61 = vsub.f32 %v579_v55, %v569_v54 }
 0x144   : > { %v588_v58 = vsel %vm587_vm7, %v934_v38, %v584_v56 }
 0x145   : > { %v593_v59 = vsel %vm590_vm8, %v592_v57, %v588_v58 }
 0x146   : > { %v595_v60 = vmul.f32 %v924_v19, %v593_v59 }
 0x148   : > { %v597_v62 = vmul.f32 %v596_v61, %v595_v60 }
 0x14a   : > { %598 = vadd.xlane.f32.xlu0 %v597_v62 }
 0x1b5   : > { %v536_v2 = vpop.xlane.xlu2 %535 }
 0x1b6   : > { %v540_v4 = vmul.f32 %v833_v1, %v536_v2 }
 0x1b8   : > { %v542_v5 = vsel %vm541_vm10, %v540_v4, 0.0 }
 0x1b9   : > { %543 = vadd.xlane.f32.xlu1 %v542_v5 }
 0x1bd   : > { %v599_v7 = vpop.xlane.xlu0 %598 }
 0x1be   : > { %v603_v8 = vmul.f32 %v834_v6, %v599_v7 }
 0x1c0   : > { %v604_v9 = vsel %vm541_vm10, %v603_v8, 0.0 }
 0x1c1   : > { %605 = vadd.xlane.f32.xlu2 %v604_v9 }
 0x22c   : > { %v544_v10 = vpop.xlane.xlu1 %543 }
 0x22d   : > { %v545_v11 = vrot.slane %v544_v10, 4 }
 0x22f   : > { %v546_v12 = vadd.f32 %v545_v11, %v544_v10 }
 0x231   : > { %v547_v13 = vrot.slane %v546_v12, 2 }
 0x233   : > { %v548_v14 = vadd.f32 %v547_v13, %v546_v12 }
 0x234   : > { %v606_v15 = vpop.xlane.xlu2 %605 }
 0x235   : > { %v607_v16 = vrot.slane %v606_v15, 4  ;;  %v549_v17 = vrot.slane %v548_v14, 1 }
 0x237   : > { %v608_v18 = vadd.f32 %v607_v16, %v606_v15  ;;  %v550_v19 = vadd.f32 %v549_v17, %v548_v14 }
 0x239   : > { %v609_v20 = vrot.slane %v608_v18, 2  ;;  %837 = vpush %v550_v19 }
 0x23b   : > { %v610_v21 = vadd.f32 %v609_v20, %v608_v18 }
 0x23d   : > { %v611_v22 = vrot.slane %v610_v21, 1 }
 0x23f   : > { %v612_v23 = vadd.f32 %v611_v22, %v610_v21 }
 0x241   : > { %839 = vpush %v612_v23 }
 0x26a   : > { %s838_s4 = spop %837 }
 0x26b   : > { %v552_v25 = vstv %s838_s4 }
 0x26c   : > { %v553_v26 = vadd.f32 %v552_v25, %v493_v24 }
 0x26e   : > { %555 = vst.msk [vmem:[%s1219_s2] sm:$0x1] %vm554_vm12, %v553_v26 }
 0x272   : > { %s840_s22 = spop %839 }
 0x273   : > { %v614_v28 = vstv %s840_s22 }
 0x274   : > { %v615_v29 = vadd.f32 %v614_v28, %v556_v27 }
 0x276   : > { %616 = vst.msk [vmem:[%s1224_s15] sm:$0x1] %vm554_vm12, %v615_v29 }
 0x277 PF: > { %s24_s8 = sadd.s32 1, %s1069_s8   ;;  %s1316_s19 = sld [smem:[#allocation8_spill]] }
 0x278   : > { %p21_p3 = scmp.ge.s32.totalorder %s24_s8, 6   ;;  %s1317_s18 = sld [smem:[#allocation9_spill]] }
 0x279   : > { %s1318_s24 = smov %s1045_s25  ;;  %s1319_s25 = smov %s1049_s26 }
 0x27a   : > { %s1320_s26 = smov %s1180_s21  ;;  %s1321_s27 = smov %s1061_s29 }
 0x27b   : > { %s1322_s28 = smov %s1065_s30  ;;  %23 = sbr.rel (!%p21_p3) target bundleno = 11 (0xb), region = 125 }
 0x27d   : > { %s1323_s29 = smov %s1316_s19 }
 0x27e   : > { %s1324_s30 = smov %s1317_s18 }
 0x280   :  { %646 = vsyncpa [#allocation3], 1 }
 0x281   :  { %648 = vsyncpa [#allocation3 + $0x1], 1 }
 0x282   :  { %649 = vsyncpa [#allocation5], 1 }
 0x283   :  { %651 = vsyncpa [#allocation5 + $0x1], 1 }

</bundles_post_ra>
